<compile_context>
chip_gen: v7x
topology: tpu7x:2x2x1
jax: 0.10.0
libtpu: 0.0.40
codegen_flags: <defaults>
</compile_context>

<pallas_src>
import functools

import jax
import jax.numpy as jnp
from jax.experimental import pallas as pl
from jax.experimental.pallas import tpu as pltpu


def _round_up(x: int, m: int) -> int:
    return ((x + m - 1) // m) * m


def _round_down(x: int, m: int) -> int:
    return (x // m) * m


def ik_net_kernel(x_ref, w1_ref, b1_ref, w2_ref, b2_ref, w3_ref, b3_ref, o_ref,
                  *, strip: int):
    # Tiny weights / biases: load once per grid step (resident in VMEM).
    w1 = w1_ref[...]   # (3, 16)
    b1 = b1_ref[...]   # (1, 16)
    w2 = w2_ref[...]   # (16, 16)
    b2 = b2_ref[...]   # (1, 16)
    w3 = w3_ref[...]   # (16, 4)
    b3 = b3_ref[...]   # (1, 4)

    def strip_body(off):
        xs = x_ref[pl.ds(off, strip), :]                                      # (strip, 3)
        h1 = jnp.maximum(
            jnp.dot(xs, w1, preferred_element_type=jnp.float32) + b1, 0.0)    # (strip, 16)
        h2 = jnp.maximum(
            jnp.dot(h1, w2, preferred_element_type=jnp.float32) + b2, 0.0)    # (strip, 16)
        y = jnp.dot(h2, w3, preferred_element_type=jnp.float32) + b3          # (strip, 4)
        o_ref[pl.ds(off, strip), :] = y.astype(o_ref.dtype)

    # Strip loop: decouples the (large) DMA tile from the compute working set.
    n_strips = x_ref.shape[0] // strip
    if n_strips == 1:
        strip_body(0)
    else:
        @pl.loop(0, n_strips)
        def _(s):
            strip_body(pl.multiple_of(s * strip, strip))


@functools.partial(jax.jit, static_argnames=("tile_b", "strip"))
def ik_net_forward(x, params, tile_b: int = 65536, strip: int = 2048):
    """Forward pass of IK_Net.

    x:      (B, 3) float32, row-major (PyTorch layout).
    params: (w1, b1, w2, b2, w3, b3) in PyTorch nn.Linear layout:
            weights (out_features, in_features), biases (out_features,).
    Returns (B, 4) float32.

    tile_b: rows per grid step (sweep 32K/64K/128K; larger on v7x's faster HBM).
    strip:  rows per in-kernel compute strip (multiple of 128).
    """
    w1, b1, w2, b2, w3, b3 = params
    B, f_in = x.shape
    assert f_in == 3 and B >= 1
    assert strip % 128 == 0 and strip >= 128

    x = x.astype(jnp.float32)

    # ---- tile / strip selection (all static under jit) ---------------------
    if B <= strip:
        # Single block covering the whole (small) batch; block dims equal the
        # full array dims, so no alignment or padding is needed at all.
        tb = B
        strip_eff = B
    else:
        strip_eff = strip
        # Largest strip-multiple tile that respects tile_b and never exceeds
        # the array shape; the ragged last grid block is masked by Pallas, so
        # B is never rounded up to a multiple of the tile.
        tb = max(strip_eff,
                 min(_round_down(tile_b, strip_eff), _round_down(B, strip_eff)))
        # v7x megacore: once the batch is big enough, cap the tile so the grid
        # has >= 2 steps (one per TensorCore) without dropping below ~16K rows
        # per step (which would re-expose the fixed per-step overhead).
        half = _round_up((B + 1) // 2, strip_eff)
        if half >= 16384:
            tb = min(tb, half)
    num_steps = pl.cdiv(B, tb)

    # Weights pre-transposed to (in, out), biases to (1, out): <=1 KiB each,
    # negligible cost, lets the kernel run plain row-major matmuls.
    w1t, w2t, w3t = w1.T, w2.T, w3.T
    b1r, b2r, b3r = b1.reshape(1, -1), b2.reshape(1, -1), b3.reshape(1, -1)

    flops = 2 * B * (3 * 16 + 16 * 16 + 16 * 4)
    param_bytes = 4 * (16 * 3 + 16 + 16 * 16 + 16 + 4 * 16 + 4)
    bytes_accessed = 4 * B * (3 + 4) + param_bytes

    return pl.pallas_call(
        functools.partial(ik_net_kernel, strip=strip_eff),
        out_shape=jax.ShapeDtypeStruct((B, 4), jnp.float32),
        grid=(num_steps,),
        in_specs=[
            pl.BlockSpec((tb, 3), lambda i: (i, 0)),     # x, streamed per tile
            pl.BlockSpec((3, 16), lambda i: (0, 0)),     # w1^T, resident
            pl.BlockSpec((1, 16), lambda i: (0, 0)),     # b1,   resident
            pl.BlockSpec((16, 16), lambda i: (0, 0)),    # w2^T, resident
            pl.BlockSpec((1, 16), lambda i: (0, 0)),     # b2,   resident
            pl.BlockSpec((16, 4), lambda i: (0, 0)),     # w3^T, resident
            pl.BlockSpec((1, 4), lambda i: (0, 0)),      # b3,   resident
        ],
        out_specs=pl.BlockSpec((tb, 4), lambda i: (i, 0)),
        compiler_params=pltpu.CompilerParams(
            dimension_semantics=("parallel",),
            vmem_limit_bytes=48 * 1024 * 1024,
        ),
        cost_estimate=pl.CostEstimate(
            flops=flops, transcendentals=0, bytes_accessed=bytes_accessed),
    )(x, w1t, b1r, w2t, b2r, w3t, b3r)


def init_params(key):
    """PyTorch nn.Linear shapes & default init: W (out,in), b (out,), U(-k, k), k = 1/sqrt(fan_in)."""
    ks = jax.random.split(key, 6)

    def lin(kw, kb, fan_in, fan_out):
        bound = 1.0 / (fan_in ** 0.5)
        w = jax.random.uniform(kw, (fan_out, fan_in), jnp.float32, -bound, bound)
        b = jax.random.uniform(kb, (fan_out,), jnp.float32, -bound, bound)
        return w, b

    w1, b1 = lin(ks[0], ks[1], 3, 16)
    w2, b2 = lin(ks[2], ks[3], 16, 16)
    w3, b3 = lin(ks[4], ks[5], 16, 4)
    return (w1, b1, w2, b2, w3, b3)


def reference_forward(x, params):
    w1, b1, w2, b2, w3, b3 = params
    h1 = jnp.maximum(x @ w1.T + b1, 0.0)
    h2 = jnp.maximum(h1 @ w2.T + b2, 0.0)
    return h2 @ w3.T + b3


if __name__ == "__main__":
    key = jax.random.PRNGKey(0)
    kx, kp = jax.random.split(key)
    params = init_params(kp)

    # Small batch: single full-array block, no strip loop, no ragged edge.
    x = jax.random.normal(kx, (8, 3), jnp.float32)
    out = jax.block_until_ready(ik_net_forward(x, params))
    ref = reference_forward(x, params)
    assert out.shape == (8, 4)
    assert jnp.allclose(out, ref, atol=1e-5, rtol=1e-5)

    # Larger batch: multi-step grid + in-kernel strip loop + ragged last block
    # (3000 is deliberately NOT a multiple of the tile -> exercises masking).
    kx2 = jax.random.fold_in(kx, 1)
    x_big = jax.random.normal(kx2, (3000, 3), jnp.float32)
    out_big = jax.block_until_ready(
        ik_net_forward(x_big, params, tile_b=2048, strip=512))
    ref_big = reference_forward(x_big, params)
    assert out_big.shape == (3000, 4)
    assert jnp.allclose(out_big, ref_big, atol=1e-5, rtol=1e-5)

    print("KERNEL_OK")
</pallas_src>

<mosaic_0001>
module attributes {stable_mosaic.version = 11 : i64} {
  func.func @ik_net_kernel(%arg0: i32, %arg1: memref<8x3xf32, #tpu.memory_space<vmem>>, %arg2: memref<3x16xf32, #tpu.memory_space<vmem>>, %arg3: memref<1x16xf32, #tpu.memory_space<vmem>>, %arg4: memref<16x16xf32, #tpu.memory_space<vmem>>, %arg5: memref<1x16xf32, #tpu.memory_space<vmem>>, %arg6: memref<16x4xf32, #tpu.memory_space<vmem>>, %arg7: memref<1x4xf32, #tpu.memory_space<vmem>>, %arg8: memref<8x4xf32, #tpu.memory_space<vmem>>) attributes {dimension_semantics = [#tpu.dimension_semantics<parallel>], iteration_bounds = array<i64: 1>, scalar_prefetch = 0 : i64, scratch_operands = 0 : i64, tpu.core_type = #tpu.core_type<tc>, window_params = [{transform_indices = @transform_0, window_bounds = array<i64: 8, 3>}, {pipeline_mode = #tpu.pipeline_mode<synchronous>, transform_indices = @transform_1, window_bounds = array<i64: 3, 16>}, {pipeline_mode = #tpu.pipeline_mode<synchronous>, transform_indices = @transform_2, window_bounds = array<i64: 1, 16>}, {pipeline_mode = #tpu.pipeline_mode<synchronous>, transform_indices = @transform_3, window_bounds = array<i64: 16, 16>}, {pipeline_mode = #tpu.pipeline_mode<synchronous>, transform_indices = @transform_4, window_bounds = array<i64: 1, 16>}, {pipeline_mode = #tpu.pipeline_mode<synchronous>, transform_indices = @transform_5, window_bounds = array<i64: 16, 4>}, {pipeline_mode = #tpu.pipeline_mode<synchronous>, transform_indices = @transform_6, window_bounds = array<i64: 1, 4>}, {transform_indices = @transform_7, window_bounds = array<i64: 8, 4>}]} {
    %c0 = arith.constant 0 : index
    %c0_0 = arith.constant 0 : index
    %0 = vector.load %arg2[%c0, %c0_0] : memref<3x16xf32, #tpu.memory_space<vmem>>, vector<3x16xf32>
    %c0_1 = arith.constant 0 : index
    %c0_2 = arith.constant 0 : index
    %1 = vector.load %arg3[%c0_1, %c0_2] : memref<1x16xf32, #tpu.memory_space<vmem>>, vector<1x16xf32>
    %c0_3 = arith.constant 0 : index
    %c0_4 = arith.constant 0 : index
    %2 = vector.load %arg4[%c0_3, %c0_4] : memref<16x16xf32, #tpu.memory_space<vmem>>, vector<16x16xf32>
    %c0_5 = arith.constant 0 : index
    %c0_6 = arith.constant 0 : index
    %3 = vector.load %arg5[%c0_5, %c0_6] : memref<1x16xf32, #tpu.memory_space<vmem>>, vector<1x16xf32>
    %c0_7 = arith.constant 0 : index
    %c0_8 = arith.constant 0 : index
    %4 = vector.load %arg6[%c0_7, %c0_8] : memref<16x4xf32, #tpu.memory_space<vmem>>, vector<16x4xf32>
    %c0_9 = arith.constant 0 : index
    %c0_10 = arith.constant 0 : index
    %5 = vector.load %arg7[%c0_9, %c0_10] : memref<1x4xf32, #tpu.memory_space<vmem>>, vector<1x4xf32>
    %c0_11 = arith.constant 0 : index
    %c0_12 = arith.constant 0 : index
    %6 = vector.load %arg1[%c0_11, %c0_12] : memref<8x3xf32, #tpu.memory_space<vmem>>, vector<8x3xf32>
    %cst = arith.constant dense<0.000000e+00> : vector<8x16xf32>
    %7 = tpu.matmul %6, %0, %cst {dimension_numbers = #tpu.dot_dimension_numbers<[1], [0], [0], [1], [0, 0, 1, 1], [], []>} : vector<8x3xf32>, vector<3x16xf32>, vector<8x16xf32> -> vector<8x16xf32>
    %8 = vector.broadcast %1 : vector<1x16xf32> to vector<8x16xf32>
    %9 = arith.addf %7, %8 : vector<8x16xf32>
    %cst_13 = arith.constant 0.000000e+00 : f32
    %10 = vector.broadcast %cst_13 : f32 to vector<8x16xf32>
    %11 = arith.maximumf %9, %10 : vector<8x16xf32>
    %cst_14 = arith.constant dense<0.000000e+00> : vector<8x16xf32>
    %12 = tpu.matmul %11, %2, %cst_14 {dimension_numbers = #tpu.dot_dimension_numbers<[1], [0], [0], [1], [0, 0, 1, 1], [], []>} : vector<8x16xf32>, vector<16x16xf32>, vector<8x16xf32> -> vector<8x16xf32>
    %13 = vector.broadcast %3 : vector<1x16xf32> to vector<8x16xf32>
    %14 = arith.addf %12, %13 : vector<8x16xf32>
    %cst_15 = arith.constant 0.000000e+00 : f32
    %15 = vector.broadcast %cst_15 : f32 to vector<8x16xf32>
    %16 = arith.maximumf %14, %15 : vector<8x16xf32>
    %cst_16 = arith.constant dense<0.000000e+00> : vector<8x4xf32>
    %17 = tpu.matmul %16, %4, %cst_16 {dimension_numbers = #tpu.dot_dimension_numbers<[1], [0], [0], [1], [0, 0, 1, 1], [], []>} : vector<8x16xf32>, vector<16x4xf32>, vector<8x4xf32> -> vector<8x4xf32>
    %18 = vector.broadcast %5 : vector<1x4xf32> to vector<8x4xf32>
    %19 = arith.addf %17, %18 : vector<8x4xf32>
    %c0_17 = arith.constant 0 : index
    %c0_18 = arith.constant 0 : index
    %20 = vector.load %arg8[%c0_17, %c0_18] : memref<8x4xf32, #tpu.memory_space<vmem>>, vector<8x4xf32>
    tpu.vector_store %arg8[%c0_17, %c0_18], %19 {strides = array<i32>} : memref<8x4xf32, #tpu.memory_space<vmem>>, vector<8x4xf32>,
    return
  }
  func.func @transform_0(%arg0: i32) -> (i32, i32) {
    %c0_i32 = arith.constant 0 : i32
    %c0_i32_0 = arith.constant 0 : i32
    return %arg0, %c0_i32 : i32, i32
  }
  func.func @transform_1(%arg0: i32) -> (i32, i32) {
    %c0_i32 = arith.constant 0 : i32
    %c0_i32_0 = arith.constant 0 : i32
    %c0_i32_1 = arith.constant 0 : i32
    return %c0_i32, %c0_i32_0 : i32, i32
  }
  func.func @transform_2(%arg0: i32) -> (i32, i32) {
    %c0_i32 = arith.constant 0 : i32
    %c0_i32_0 = arith.constant 0 : i32
    %c0_i32_1 = arith.constant 0 : i32
    return %c0_i32, %c0_i32_0 : i32, i32
  }
  func.func @transform_3(%arg0: i32) -> (i32, i32) {
    %c0_i32 = arith.constant 0 : i32
    %c0_i32_0 = arith.constant 0 : i32
    %c0_i32_1 = arith.constant 0 : i32
    return %c0_i32, %c0_i32_0 : i32, i32
  }
  func.func @transform_4(%arg0: i32) -> (i32, i32) {
    %c0_i32 = arith.constant 0 : i32
    %c0_i32_0 = arith.constant 0 : i32
    %c0_i32_1 = arith.constant 0 : i32
    return %c0_i32, %c0_i32_0 : i32, i32
  }
  func.func @transform_5(%arg0: i32) -> (i32, i32) {
    %c0_i32 = arith.constant 0 : i32
    %c0_i32_0 = arith.constant 0 : i32
    %c0_i32_1 = arith.constant 0 : i32
    return %c0_i32, %c0_i32_0 : i32, i32
  }
  func.func @transform_6(%arg0: i32) -> (i32, i32) {
    %c0_i32 = arith.constant 0 : i32
    %c0_i32_0 = arith.constant 0 : i32
    %c0_i32_1 = arith.constant 0 : i32
    return %c0_i32, %c0_i32_0 : i32, i32
  }
  func.func @transform_7(%arg0: i32) -> (i32, i32) {
    %c0_i32 = arith.constant 0 : i32
    %c0_i32_0 = arith.constant 0 : i32
    return %arg0, %c0_i32 : i32, i32
  }
}

</mosaic_0001>

<bundles_post_ra>
// kernel: ik_net_forward.1
= control target key start
LH: loop header
LB: loop body
LE: loop exit
PB: predicated region body
PF: predicated region fallthrough
CT: control target
= control target key end

     0   :  { %vm45_vm0 = vcmask 1042432   ;;  %vm41_vm1 = vcmask 23552   ;;  %v329_v0 = vmov 0.0   ;;  %vm330_vm2 = vmmov 0   ;;  %s402_s1 = inlined_call_operand.vmem [shape: f32[3,16], index: 1, kind: input, shape index: {}]   ;;  %s403_s0 = inlined_call_operand.vmem [shape: f32[8,3], index: 0, kind: input, shape index: {}]   ;;  %s404_s3 = inlined_call_operand.vmem [shape: f32[16,16], index: 3, kind: input, shape index: {}]   ;;  %s405_s2 = inlined_call_operand.vmem [shape: f32[1,16], index: 2, kind: input, shape index: {}]   ;;  %s406_s5 = inlined_call_operand.vmem [shape: f32[16,4], index: 5, kind: input, shape index: {}]   ;;  %s407_s4 = inlined_call_operand.vmem [shape: f32[1,16], index: 4, kind: input, shape index: {}]   ;;  %s408_s6 = inlined_call_operand.vmem [shape: f32[1,4], index: 6, kind: input, shape index: {}]   ;;  %s409_s7 = inlined_call_operand.vmem [shape: f32[8,4], index: 7, kind: output, shape index: {}]  }
   0x1   :  { %301 = vmatprep.subr.mxu0 %v329_v0  ;;  %v26_v1 = vld [vmem:[%s402_s1] sm:$0x7]  ;;  %303 = vmatprep.mubr.msk.f32.mxu0 %vm330_vm2, %v329_v0  ;;  %v29_v4 = vld [vmem:[%s404_s3 + $0x8] sm:$0xff]  ;;  %v331_v6 = vmov 0.0|0.0   ;;  %vm126_vm3 = vcmask 130048   ;;  %vm280_vm4 = vcmask 31744  }
   0x2   :  { %v34_v2 = vld [vmem:[%s403_s0] sm:$0xff]  ;;  %302 = vmatpush3.msk.msra.mxu0 %vm45_vm0, %v26_v1  ;;  %310 = vmatprep.mubr.msk.f32.mxu1 %vm330_vm2, %v329_v0  ;;  %v32_v13 = vld [vmem:[%s406_s5 + $0x8] sm:$0xff] }
   0x3   :  { %304 = vmatmul.mubr.msk.f32.vlgmr.msra.gmra.mrb[0].mxu0 %vm41_vm1, %v34_v2  ;;  %v28_v3 = vld [vmem:[%s404_s3] sm:$0xff]  ;;  %320 = vmatprep.subr.bf16.mxu1 %v331_v6 }
   0x4   :  { %317 = vmatprep.mubr.msk.f32.mxu0 %vm330_vm2, %v329_v0  ;;  %v321_v5 = vpack.c.bf16 %v29_v4, %v28_v3  ;;  %323 = vmatprep.subr.bf16.mxu0 %v331_v6  ;;  %v286_v7 = vld [vmem:[%s405_s2] ss:$0 sm:$0xff] }
   0x5   :  { %v31_v12 = vld [vmem:[%s406_s5] sm:$0xff] }
   0x6   :  { %322 = vmatpush3.bf16.msra.mxu1 %v321_v5  ;;  %v324_v14 = vpack.c.bf16 %v32_v13, %v31_v12  ;;  %v289_v15 = vld [vmem:[%s407_s4] ss:$0 sm:$0xff] }
   0x7   :  { %v291_v20 = vld [vmem:[%s408_s6] ss:$0 sm:$0xff] }
   0x8   :  { %325 = vmatpush3.bf16.msra.mxu0 %v324_v14 }
  0xd6   :  { %v115_v8 = vpop.f32.mrb[0].mxu0 }
  0xd7   :  { %v116_v9 = vadd.f32 %v286_v7, %v115_v8  ;;  %v305_v10 = vpop.f32.mrb[1].mxu0 }
  0xd9   :  { %v119_v11 = vmax.f32 %v116_v9, 0.0 }
  0xdb   :  { %311 = vmatmul.mubr.msk.f32.vlgmr.msra.gmra.mrb[0].mxu1 %vm126_vm3, %v119_v11 }
 0x1ae   :  { %v196_v16 = vpop.f32.mrb[0].mxu1 }
 0x1af   :  { %v197_v17 = vadd.f32 %v289_v15, %v196_v16  ;;  %v312_v18 = vpop.f32.mrb[1].mxu1 }
 0x1b1   :  { %v200_v19 = vmax.f32 %v197_v17, 0.0 }
 0x1b3   :  { %318 = vmatmul.mubr.msk.f32.vlgmr.msra.gmra.mrb[2].mxu0 %vm126_vm3, %v200_v19 }
 0x286   :  { %v276_v21 = vpop.f32.mrb[2].mxu0 }
 0x287   :  { %v277_v22 = vadd.f32 %v291_v20, %v276_v21  ;;  %v319_v23 = vpop.f32.mrb[3].mxu0 }
 0x289   :  { %281 = vst.msk [vmem:[%s409_s7] sm:$0xff] %vm280_vm4, %v277_v22 }

</bundles_post_ra>
